<compile_context>
chip_gen: v6e
topology: v6e:2x2x1
jax: 0.10.0
libtpu: 0.0.40
codegen_flags: <defaults>
</compile_context>

<pallas_src>
import functools

import jax
import jax.numpy as jnp
from jax.experimental import pallas as pl
from jax.experimental.pallas import tpu as pltpu


def _fftconv_kernel(x_ref, band_ref, o_ref, xt_ref, acc_ref, *, hc, T):
    # x_ref:    (Bc, hc, Lp)   bf16 input rows, resident for the whole q sweep
    # band_ref: (Qn, hc, T, T) bf16 causal Toeplitz diagonals, resident per hb
    # o_ref:    (Bc, hc, T)    output tile q (original (B, H, L) layout, lane-dense)
    # xt_ref:   (hc, Bc, Lp)   channel-major copy of x (built once per (hb, bb))
    # acc_ref:  (hc, Bc, T)    f32 accumulator for the current output tile
    q = pl.program_id(2)

    @pl.when(q == 0)
    def _build_xt():
        # One-time (per channel/batch block) relayout so every per-step matmul
        # is a dense leading-batch dot_general (no per-step sublane-masked
        # slicing / read-modify-write of the accumulator).
        for h in range(hc):
            xt_ref[h] = x_ref[:, h, :]

    acc_ref[...] = jnp.zeros_like(acc_ref)

    def body(k, carry):
        start = pl.multiple_of(k * T, 128)
        xk = xt_ref[:, :, pl.ds(start, T)]        # (hc, Bc, T)  bf16
        bd = band_ref[q - k]                      # (hc, T, T)   bf16, diag d = q - k
        # Batched MXU matmul (batch = channel, M = Bc, K = N = T), f32 accumulate.
        acc_ref[...] += jax.lax.dot_general(
            xk, bd,
            dimension_numbers=(((2,), (1,)), ((0,), (0,))),
            preferred_element_type=jnp.float32)
        return carry

    jax.lax.fori_loop(0, q + 1, body, 0)          # causal: only k <= q

    # Writeback (once per output tile, not per reduction step).
    for h in range(hc):
        o_ref[:, h, :] = acc_ref[h].astype(o_ref.dtype)


def _vmem_budget():
    cap = 64 * 1024 * 1024                        # conservative fallback (v7x per-TC)
    try:
        info_cap = int(pltpu.get_tpu_info().vmem_capacity_bytes)
        if info_cap > 0:
            cap = info_cap
    except Exception:
        pass
    # ~96 MiB on 128 MiB chips (v5e/v6e), ~48 MiB on 64 MiB v7x.
    return max(32 * 1024 * 1024, min(96 * 1024 * 1024, (cap * 3) // 4))


def _choose_config(B, H, Lp, out_itemsize, budget):
    """Pick (hc, T, Hp, n_hb, n_bb, Bc) so the resident-band footprint fits VMEM."""
    if H % 16 == 0:
        hcs = [16, 8]                 # bf16 sublane-packed channel block preferred
    elif H % 8 == 0 or H > 8:
        hcs = [8]                     # H > 8 non-multiples of 8 get padded to 8k
    else:
        hcs = [H]                     # small H: full-dim block (no padding)
    ts = [t for t in (512, 256, 128) if Lp % t == 0]

    best = None
    for hc in hcs:
        Hp = -(-H // hc) * hc
        n_hb = Hp // hc
        # v7x has 2 TensorCores: guarantee >=2 parallel blocks when H is tiny.
        n_bb = 2 if (n_hb == 1 and B % 2 == 0 and B >= 2) else 1
        Bc = B // n_bb
        for T in ts:
            Qn = Lp // T
            need = (Qn * hc * T * T * 2 * 2                 # band (bf16, double-buffered)
                    + Bc * hc * Lp * 2 * 2                  # x block (bf16, double-buffered)
                    + hc * max(Bc, 16) * Lp * 2             # xt scratch (sublane-padded)
                    + hc * max(Bc, 8) * T * 4               # f32 accumulator
                    + Bc * hc * T * out_itemsize * 2        # out block (double-buffered)
                    + (2 << 20))                            # headroom / internal scratch
            cfg = (hc, T, Hp, n_hb, n_bb, Bc)
            if need <= budget:
                return cfg
            if best is None or need < best[0]:
                best = (need, cfg)
    return best[1]


def _build_band(filt, Lp, T, mxu_dtype):
    """Compact causal Toeplitz diagonals: band[d, h, j, i] = filt[h, d*T + i - j]."""
    Qn = Lp // T
    fb = filt.astype(mxu_dtype)                              # build directly in bf16
    dd = jnp.arange(Qn, dtype=jnp.int32)[:, None, None]
    jj = jnp.arange(T, dtype=jnp.int32)[None, :, None]
    ii = jnp.arange(T, dtype=jnp.int32)[None, None, :]
    lag = dd * T + ii - jj                                   # (Qn, T, T)
    taps = jnp.take(fb, jnp.clip(lag, 0, Lp - 1), axis=1)    # (H, Qn, T, T)
    band = jnp.where(lag[None] >= 0, taps, jnp.zeros((), mxu_dtype))
    return jnp.transpose(band, (1, 0, 2, 3)).astype(mxu_dtype)   # (Qn, H, T, T)


def fftconv(x, filt, *, mxu_dtype=jnp.bfloat16):
    """Causal depthwise conv (== fused_fftconv). x: (B,H,L), filt: (H,L) -> (B,H,L)."""
    B, H, L = x.shape
    assert filt.shape == (H, L), (filt.shape, (H, L))
    out_dtype = x.dtype

    Lp = ((L + 127) // 128) * 128
    budget = _vmem_budget()
    hc, T, Hp, n_hb, n_bb, Bc = _choose_config(
        B, H, Lp, jnp.dtype(out_dtype).itemsize, budget)
    Qn = Lp // T

    # Pad channel / sequence dims; cast the x MXU operand to bf16 ONCE here
    # (halves x HBM traffic + VMEM; zero-padded channels produce zero outputs).
    xb = x.astype(mxu_dtype)
    fb = filt
    if Lp != L or Hp != H:
        xb = jnp.pad(xb, ((0, 0), (0, Hp - H), (0, Lp - L)))
        fb = jnp.pad(fb, ((0, Hp - H), (0, Lp - L)))

    band = _build_band(fb, Lp, T, mxu_dtype)                 # (Qn, Hp, T, T) bf16

    kernel = functools.partial(_fftconv_kernel, hc=hc, T=T)

    out = pl.pallas_call(
        kernel,
        out_shape=jax.ShapeDtypeStruct((B, Hp, Lp), out_dtype),
        grid_spec=pltpu.PrefetchScalarGridSpec(
            num_scalar_prefetch=0,
            grid=(n_hb, n_bb, Qn),
            in_specs=[
                # Full sequence row per (batch block, channel block): resident
                # across the whole q sweep -> each x byte DMA'd exactly once.
                pl.BlockSpec((Bc, hc, Lp), lambda hb, bb, q: (bb, hb, 0)),
                # All Qn diagonal tiles for this channel block: resident across
                # the bb/q sweeps -> each band byte DMA'd exactly once per hb.
                pl.BlockSpec((Qn, hc, T, T), lambda hb, bb, q: (0, hb, 0, 0)),
            ],
            out_specs=pl.BlockSpec((Bc, hc, T), lambda hb, bb, q: (bb, hb, q)),
            scratch_shapes=[
                pltpu.VMEM((hc, Bc, Lp), mxu_dtype),          # channel-major x copy
                pltpu.VMEM((hc, Bc, T), jnp.float32),         # f32 accumulator
            ],
        ),
        compiler_params=pltpu.CompilerParams(
            # hb / bb blocks are fully independent -> megacore-shardable; the
            # q axis is sequential (xt built at q == 0) -> arbitrary.
            dimension_semantics=("parallel", "parallel", "arbitrary"),
            vmem_limit_bytes=budget,
        ),
    )(xb, band)

    if Hp != H or Lp != L:
        out = out[:, :H, :L]
    return out


def _ref_fftconv(x, filt):
    """Pure-JAX reference: exactly what fused_fftconv computes (causal conv via FFT)."""
    B, H, L = x.shape
    xf = jnp.fft.rfft(x.astype(jnp.float32), n=2 * L, axis=-1)
    kf = jnp.fft.rfft(filt.astype(jnp.float32), n=2 * L, axis=-1)
    y = jnp.fft.irfft(xf * kf[None], n=2 * L, axis=-1)[..., :L]
    return y.astype(x.dtype)


if __name__ == "__main__":
    # Small deterministic inputs consistent with fftconv conventions.
    B, H, L = 2, 4, 128
    key = jax.random.PRNGKey(0)
    kx, kf = jax.random.split(key)
    x = jax.random.normal(kx, (B, H, L), dtype=jnp.float32)
    filt = jax.random.normal(kf, (H, L), dtype=jnp.float32) * 0.1

    out = jax.jit(fftconv)(x, filt)
    out = jax.block_until_ready(out)

    ref = _ref_fftconv(x, filt)
    assert out.shape == x.shape and out.dtype == x.dtype
    # bf16 MXU operands (f32 accumulation) => ~1e-2-scale tolerance vs f32 FFT ref.
    assert jnp.allclose(out, ref, atol=2e-2, rtol=2e-2), (
        "mismatch vs FFT reference; max |diff| = "
        f"{float(jnp.max(jnp.abs(out - ref)))}")

    print("KERNEL_OK")
</pallas_src>

<mosaic_0001>
module attributes {stable_mosaic.version = 11 : i64} {
  func.func @_fftconv_kernel(%arg0: i32, %arg1: i32, %arg2: i32, %arg3: memref<1x4x128xbf16, #tpu.memory_space<vmem>>, %arg4: memref<1x4x128x128xbf16, #tpu.memory_space<vmem>>, %arg5: memref<1x4x128xf32, #tpu.memory_space<vmem>>, %arg6: memref<4x1x128xbf16, #tpu.memory_space<vmem>>, %arg7: memref<4x1x128xf32, #tpu.memory_space<vmem>>) attributes {dimension_semantics = [#tpu.dimension_semantics<parallel>, #tpu.dimension_semantics<parallel>, #tpu.dimension_semantics<arbitrary>], iteration_bounds = array<i64: 1, 2, 1>, scalar_prefetch = 0 : i64, scratch_operands = 2 : i64, tpu.core_type = #tpu.core_type<tc>, window_params = [{transform_indices = @transform_0, window_bounds = array<i64: 1, 4, 128>}, {transform_indices = @transform_1, window_bounds = array<i64: 1, 4, 128, 128>}, {transform_indices = @transform_2, window_bounds = array<i64: 1, 4, 128>}]} {
    %c0_i32 = arith.constant 0 : i32
    %0 = arith.cmpi eq, %arg2, %c0_i32 : i32
    %1 = arith.extui %0 : i1 to i32
    %c0_i32_0 = arith.constant 0 : i32
    %2 = arith.cmpi ne, %1, %c0_i32_0 : i32
    scf.if %2 {
      %c0_27 = arith.constant 0 : index
      %c0_28 = arith.constant 0 : index
      %c0_29 = arith.constant 0 : index
      %28 = vector.load %arg3[%c0_27, %c0_28, %c0_29] : memref<1x4x128xbf16, #tpu.memory_space<vmem>>, vector<1x1x128xbf16>
      %29 = vector.shape_cast %28 : vector<1x1x128xbf16> to vector<1x128xbf16>
      %c0_30 = arith.constant 0 : index
      %c0_31 = arith.constant 0 : index
      %c0_32 = arith.constant 0 : index
      %30 = vector.load %arg6[%c0_30, %c0_31, %c0_32] : memref<4x1x128xbf16, #tpu.memory_space<vmem>>, vector<1x1x128xbf16>
      %31 = vector.shape_cast %30 : vector<1x1x128xbf16> to vector<1x128xbf16>
      %32 = vector.shape_cast %29 : vector<1x128xbf16> to vector<1x1x128xbf16>
      tpu.vector_store %arg6[%c0_30, %c0_31, %c0_32], %32 {strides = array<i32>} : memref<4x1x128xbf16, #tpu.memory_space<vmem>>, vector<1x1x128xbf16>,
      %c0_33 = arith.constant 0 : index
      %c1_34 = arith.constant 1 : index
      %c0_35 = arith.constant 0 : index
      %33 = vector.load %arg3[%c0_33, %c1_34, %c0_35] : memref<1x4x128xbf16, #tpu.memory_space<vmem>>, vector<1x1x128xbf16>
      %34 = vector.shape_cast %33 : vector<1x1x128xbf16> to vector<1x128xbf16>
      %c1_36 = arith.constant 1 : index
      %c0_37 = arith.constant 0 : index
      %c0_38 = arith.constant 0 : index
      %35 = vector.load %arg6[%c1_36, %c0_37, %c0_38] : memref<4x1x128xbf16, #tpu.memory_space<vmem>>, vector<1x1x128xbf16>
      %36 = vector.shape_cast %35 : vector<1x1x128xbf16> to vector<1x128xbf16>
      %37 = vector.shape_cast %34 : vector<1x128xbf16> to vector<1x1x128xbf16>
      tpu.vector_store %arg6[%c1_36, %c0_37, %c0_38], %37 {strides = array<i32>} : memref<4x1x128xbf16, #tpu.memory_space<vmem>>, vector<1x1x128xbf16>,
      %c0_39 = arith.constant 0 : index
      %c2_40 = arith.constant 2 : index
      %c0_41 = arith.constant 0 : index
      %38 = vector.load %arg3[%c0_39, %c2_40, %c0_41] : memref<1x4x128xbf16, #tpu.memory_space<vmem>>, vector<1x1x128xbf16>
      %39 = vector.shape_cast %38 : vector<1x1x128xbf16> to vector<1x128xbf16>
      %c2_42 = arith.constant 2 : index
      %c0_43 = arith.constant 0 : index
      %c0_44 = arith.constant 0 : index
      %40 = vector.load %arg6[%c2_42, %c0_43, %c0_44] : memref<4x1x128xbf16, #tpu.memory_space<vmem>>, vector<1x1x128xbf16>
      %41 = vector.shape_cast %40 : vector<1x1x128xbf16> to vector<1x128xbf16>
      %42 = vector.shape_cast %39 : vector<1x128xbf16> to vector<1x1x128xbf16>
      tpu.vector_store %arg6[%c2_42, %c0_43, %c0_44], %42 {strides = array<i32>} : memref<4x1x128xbf16, #tpu.memory_space<vmem>>, vector<1x1x128xbf16>,
      %c0_45 = arith.constant 0 : index
      %c3_46 = arith.constant 3 : index
      %c0_47 = arith.constant 0 : index
      %43 = vector.load %arg3[%c0_45, %c3_46, %c0_47] : memref<1x4x128xbf16, #tpu.memory_space<vmem>>, vector<1x1x128xbf16>
      %44 = vector.shape_cast %43 : vector<1x1x128xbf16> to vector<1x128xbf16>
      %c3_48 = arith.constant 3 : index
      %c0_49 = arith.constant 0 : index
      %c0_50 = arith.constant 0 : index
      %45 = vector.load %arg6[%c3_48, %c0_49, %c0_50] : memref<4x1x128xbf16, #tpu.memory_space<vmem>>, vector<1x1x128xbf16>
      %46 = vector.shape_cast %45 : vector<1x1x128xbf16> to vector<1x128xbf16>
      %47 = vector.shape_cast %44 : vector<1x128xbf16> to vector<1x1x128xbf16>
      tpu.vector_store %arg6[%c3_48, %c0_49, %c0_50], %47 {strides = array<i32>} : memref<4x1x128xbf16, #tpu.memory_space<vmem>>, vector<1x1x128xbf16>,
    } else {
    }
    %cst = arith.constant 0.000000e+00 : f32
    %3 = vector.broadcast %cst : f32 to vector<4x1x128xf32>
    %c0 = arith.constant 0 : index
    %c0_1 = arith.constant 0 : index
    %c0_2 = arith.constant 0 : index
    %4 = vector.load %arg7[%c0, %c0_1, %c0_2] : memref<4x1x128xf32, #tpu.memory_space<vmem>>, vector<4x1x128xf32>
    tpu.vector_store %arg7[%c0, %c0_1, %c0_2], %3 {strides = array<i32>} : memref<4x1x128xf32, #tpu.memory_space<vmem>>, vector<4x1x128xf32>,
    %c1_i32 = arith.constant 1 : i32
    %5 = arith.addi %arg2, %c1_i32 : i32
    %c0_i32_3 = arith.constant 0 : i32
    %c0_i32_4 = arith.constant 0 : i32
    %6 = arith.subi %5, %c0_i32_4 : i32
    %7 = arith.addi %c0_i32_4, %6 : i32
    %c1_i32_5 = arith.constant 1 : i32
    scf.for %arg8 = %c0_i32_4 to %7 step %c1_i32_5  : i32 {
      %c128_i32 = arith.constant 128 : i32
      %28 = arith.muli %arg8, %c128_i32 : i32
      %29 = tpu.assume_multiple %28, 128 : i32
      %c0_27 = arith.constant 0 : index
      %c0_28 = arith.constant 0 : index
      %30 = arith.index_cast %29 : i32 to index
      %31 = vector.load %arg6[%c0_27, %c0_28, %30] : memref<4x1x128xbf16, #tpu.memory_space<vmem>>, vector<4x1x128xbf16>
      %32 = arith.subi %arg2, %arg8 : i32
      %33 = arith.index_cast %32 : i32 to index
      %c0_29 = arith.constant 0 : index
      %c0_30 = arith.constant 0 : index
      %c0_31 = arith.constant 0 : index
      %34 = vector.load %arg4[%33, %c0_29, %c0_30, %c0_31] : memref<1x4x128x128xbf16, #tpu.memory_space<vmem>>, vector<1x4x128x128xbf16>
      %35 = vector.shape_cast %34 : vector<1x4x128x128xbf16> to vector<4x128x128xbf16>
      %c0_32 = arith.constant 0 : index
      %c0_33 = arith.constant 0 : index
      %c0_34 = arith.constant 0 : index
      %36 = vector.load %arg7[%c0_32, %c0_33, %c0_34] : memref<4x1x128xf32, #tpu.memory_space<vmem>>, vector<4x1x128xf32>
      %cst_35 = arith.constant dense<0.000000e+00> : vector<4x1x128xf32>
      %37 = tpu.matmul %31, %35, %cst_35 {dimension_numbers = #tpu.dot_dimension_numbers<[2], [1], [1], [2], [0, 0, 0, 1, 1, 2], [0], [0]>} : vector<4x1x128xbf16>, vector<4x128x128xbf16>, vector<4x1x128xf32> -> vector<4x1x128xf32>
      %38 = arith.addf %36, %37 : vector<4x1x128xf32>
      %c0_36 = arith.constant 0 : index
      %c0_37 = arith.constant 0 : index
      %c0_38 = arith.constant 0 : index
      %39 = vector.load %arg7[%c0_36, %c0_37, %c0_38] : memref<4x1x128xf32, #tpu.memory_space<vmem>>, vector<4x1x128xf32>
      tpu.vector_store %arg7[%c0_36, %c0_37, %c0_38], %38 {strides = array<i32>} : memref<4x1x128xf32, #tpu.memory_space<vmem>>, vector<4x1x128xf32>,
    }
    %c0_6 = arith.constant 0 : index
    %c0_7 = arith.constant 0 : index
    %c0_8 = arith.constant 0 : index
    %8 = vector.load %arg7[%c0_6, %c0_7, %c0_8] : memref<4x1x128xf32, #tpu.memory_space<vmem>>, vector<1x1x128xf32>
    %9 = vector.shape_cast %8 : vector<1x1x128xf32> to vector<1x128xf32>
    %c0_9 = arith.constant 0 : index
    %c0_10 = arith.constant 0 : index
    %c0_11 = arith.constant 0 : index
    %10 = vector.load %arg5[%c0_9, %c0_10, %c0_11] : memref<1x4x128xf32, #tpu.memory_space<vmem>>, vector<1x1x128xf32>
    %11 = vector.shape_cast %10 : vector<1x1x128xf32> to vector<1x128xf32>
    %12 = vector.shape_cast %9 : vector<1x128xf32> to vector<1x1x128xf32>
    tpu.vector_store %arg5[%c0_9, %c0_10, %c0_11], %12 {strides = array<i32>} : memref<1x4x128xf32, #tpu.memory_space<vmem>>, vector<1x1x128xf32>,
    %c1 = arith.constant 1 : index
    %c0_12 = arith.constant 0 : index
    %c0_13 = arith.constant 0 : index
    %13 = vector.load %arg7[%c1, %c0_12, %c0_13] : memref<4x1x128xf32, #tpu.memory_space<vmem>>, vector<1x1x128xf32>
    %14 = vector.shape_cast %13 : vector<1x1x128xf32> to vector<1x128xf32>
    %c0_14 = arith.constant 0 : index
    %c1_15 = arith.constant 1 : index
    %c0_16 = arith.constant 0 : index
    %15 = vector.load %arg5[%c0_14, %c1_15, %c0_16] : memref<1x4x128xf32, #tpu.memory_space<vmem>>, vector<1x1x128xf32>
    %16 = vector.shape_cast %15 : vector<1x1x128xf32> to vector<1x128xf32>
    %17 = vector.shape_cast %14 : vector<1x128xf32> to vector<1x1x128xf32>
    tpu.vector_store %arg5[%c0_14, %c1_15, %c0_16], %17 {strides = array<i32>} : memref<1x4x128xf32, #tpu.memory_space<vmem>>, vector<1x1x128xf32>,
    %c2 = arith.constant 2 : index
    %c0_17 = arith.constant 0 : index
    %c0_18 = arith.constant 0 : index
    %18 = vector.load %arg7[%c2, %c0_17, %c0_18] : memref<4x1x128xf32, #tpu.memory_space<vmem>>, vector<1x1x128xf32>
    %19 = vector.shape_cast %18 : vector<1x1x128xf32> to vector<1x128xf32>
    %c0_19 = arith.constant 0 : index
    %c2_20 = arith.constant 2 : index
    %c0_21 = arith.constant 0 : index
    %20 = vector.load %arg5[%c0_19, %c2_20, %c0_21] : memref<1x4x128xf32, #tpu.memory_space<vmem>>, vector<1x1x128xf32>
    %21 = vector.shape_cast %20 : vector<1x1x128xf32> to vector<1x128xf32>
    %22 = vector.shape_cast %19 : vector<1x128xf32> to vector<1x1x128xf32>
    tpu.vector_store %arg5[%c0_19, %c2_20, %c0_21], %22 {strides = array<i32>} : memref<1x4x128xf32, #tpu.memory_space<vmem>>, vector<1x1x128xf32>,
    %c3 = arith.constant 3 : index
    %c0_22 = arith.constant 0 : index
    %c0_23 = arith.constant 0 : index
    %23 = vector.load %arg7[%c3, %c0_22, %c0_23] : memref<4x1x128xf32, #tpu.memory_space<vmem>>, vector<1x1x128xf32>
    %24 = vector.shape_cast %23 : vector<1x1x128xf32> to vector<1x128xf32>
    %c0_24 = arith.constant 0 : index
    %c3_25 = arith.constant 3 : index
    %c0_26 = arith.constant 0 : index
    %25 = vector.load %arg5[%c0_24, %c3_25, %c0_26] : memref<1x4x128xf32, #tpu.memory_space<vmem>>, vector<1x1x128xf32>
    %26 = vector.shape_cast %25 : vector<1x1x128xf32> to vector<1x128xf32>
    %27 = vector.shape_cast %24 : vector<1x128xf32> to vector<1x1x128xf32>
    tpu.vector_store %arg5[%c0_24, %c3_25, %c0_26], %27 {strides = array<i32>} : memref<1x4x128xf32, #tpu.memory_space<vmem>>, vector<1x1x128xf32>,
    return
  }
  func.func @transform_0(%arg0: i32, %arg1: i32, %arg2: i32) -> (i32, i32, i32) {
    %c0_i32 = arith.constant 0 : i32
    %c0_i32_0 = arith.constant 0 : i32
    return %arg1, %arg0, %c0_i32 : i32, i32, i32
  }
  func.func @transform_1(%arg0: i32, %arg1: i32, %arg2: i32) -> (i32, i32, i32, i32) {
    %c0_i32 = arith.constant 0 : i32
    %c0_i32_0 = arith.constant 0 : i32
    %c0_i32_1 = arith.constant 0 : i32
    %c0_i32_2 = arith.constant 0 : i32
    return %c0_i32, %arg0, %c0_i32_0, %c0_i32_1 : i32, i32, i32, i32
  }
  func.func @transform_2(%arg0: i32, %arg1: i32, %arg2: i32) -> (i32, i32, i32) {
    %c0_i32 = arith.constant 0 : i32
    return %arg1, %arg0, %arg2 : i32, i32, i32
  }
}

</mosaic_0001>

<bundles_post_ra>
// kernel: fftconv.1
= control target key start
LH: loop header
LB: loop body
LE: loop exit
PB: predicated region body
PF: predicated region fallthrough
CT: control target
= control target key end

     0   :  { %7 = vsyncpa [#allocation5], 0  ;;  %s1427_s0 = inlined_call_operand.vmem [shape: bf16[2,4,128], index: 0, kind: input, shape index: {}]   ;;  %s1428_s1 = inlined_call_operand.vmem [shape: bf16[1,4,128,128], index: 1, kind: input, shape index: {}]   ;;  %s1429_s2 = inlined_call_operand.hbm [shape: f32[2,4,128], index: 2, kind: output, shape index: {}]  }
   0x1   :  { %9 = vsyncpa [#allocation5 + $0x1], 0  ;;  %s1212_s9 = smov 0   ;;  %s1214_s10 = smov 0  }
   0x2   :  { %s1216_s11 = smov 0   ;;  %s1218_s12 = smov 0  }
   0x3   :  { %s1220_s13 = smov 0   ;;  %s1222_s14 = smov 0  }
   0x4 LB: > { %s840_s15 = sadd.s32 4294967295, %s1187_s14   ;;  %s841_s16 = sadd.s32 4294967294, %s1187_s14   ;;  %s1187_s14 = sphi %s1222_s14, %s15_s14   ;;  %s1183_s13 = sphi %s1220_s13, %s1438_s13   ;;  %s1179_s12 = sphi %s1218_s12, %s1437_s12   ;;  %s1175_s11 = sphi %s1216_s11, %s1436_s11   ;;  %s1171_s10 = sphi %s1214_s10, %s1435_s10   ;;  %s1167_s9 = sphi %s1212_s9, %s1434_s9  }
   0x5   : > { %s30_s17 = sadd.s32 1, %s1183_s13  ;;  %s99_s18 = sadd.s32 1, %s1175_s11 }
   0x6   : > { %p32_p0 = scmp.ge.s32.totalorder %s30_s17, 2  ;;  %p109_p1 = scmp.ne.s32.totalorder %s1175_s11, %s1171_s10 }
   0x7   : > { %p110_p2 = scmp.eq.s32.totalorder %s840_s15, 1  ;;  %p115_p3 = scmp.ne.s32.totalorder %s1171_s10, %s1167_s9 }
   0x8   : > { %s1440_s17 = smov (%p32_p0, %s30_s17), 0  ;;  %p116_p5 = scmp.eq.s32.totalorder %s841_s16, 1 }
   0x9   : > { %p1252_p4 = por %p110_p2, %p109_p1  ;;  %s92_s20 = ssub.s32 %s1183_s13, %s1440_s17 }
   0xa   : > { %p845_p6 = scmp.ge.s32.totalorder %s1187_s14, 1  ;;  %p97_p7 = scmp.eq.s32.totalorder %s92_s20, 0 }
   0xb   : > { %p1259_p8 = por %p116_p5, %p115_p3  ;;  %p154_p9 = scmp.lt.s32.totalorder %s1187_s14, 3 }
   0xc   : > { %s1265_s22 = scalar_select %p97_p7, %s1175_s11, %s99_s18  }
   0xd   : > { %p155_p10 = pnand %p845_p6, %p154_p9 }
   0xe   : > { %s181_s23 = sand.u32 (!%p155_p10), 1, %s1171_s10   ;;  %p184_p11 = scmp.lt.s32.totalorder (!%p155_p10), %s1179_s12, 1 }
   0xf   : > { %158 = sbr.rel (%p155_p10) target bundleno = 315 (0x13b), region = 28  ;;  %s1271_s24 = sshll.u32 (!%p155_p10), %s181_s23, 2 }
  0x10   : > { %s183_s30 = scalar_lea.vmem (!%p155_p10), [#allocation4], %s1271_s24  ;;  %s1290_s3 = smov (!%p155_p10), 0  }
  0x14   : > { %v1193_v0 = vmov 0.0   ;;  %vm204_vm0 = vcmask 1040384   ;;  %vm205_vm1 = vsmask.f32 256  ;;  %s185_s25 = scalar_select %p184_p11, %s1179_s12, 1 }
  0x15   : > { %264 = vst [vmem:[#allocation3] sm:$0x1] %v1193_v0  ;;  %265 = vst [vmem:[#allocation3 + $0x1] sm:$0x1] %v1193_v0  ;;  %v207_v2 = vld [vmem:[#allocation2] sm:$0x1] }
  0x16   : > { %266 = vst [vmem:[#allocation3 + $0x2] sm:$0x1] %v1193_v0  ;;  %267 = vst [vmem:[#allocation3 + $0x3] sm:$0x1] %v1193_v0  ;;  %s847_s26 = sshll.u32 %s185_s25, 1 }
  0x17   : > { %vm1274_vm2 = vmand %vm204_vm0, %vm205_vm1  ;;  %s190_s29 = scalar_lea.vmem %s1427_s0, %s847_s26  ;;  %v226_v3 = vld [vmem:[#allocation2 + $0x1] sm:$0x1]  ;;  %v241_v4 = vld [vmem:[#allocation2 + $0x2] sm:$0x1] }
  0x18   : > { %v203_v5 = vld [vmem:[%s190_s29] sm:$0x1]  ;;  %v850_v9 = vld.sshfl [vmem:[%s190_s29] sm:$0x10 pattern:$0x75316420] }
  0x19   : > { %v848_v6 = vld.sshfl [vmem:[%s190_s29] sm:$0x1 pattern:$0x75316420]  ;;  %v208_v7 = vsel %vm1274_vm2, %v203_v5, %v207_v2  ;;  %v238_v10 = vcombine.high %v850_v9, %v850_v9  ;;  %v261_v12 = vld [vmem:[#allocation2 + $0x3] sm:$0x1] }
  0x1a   : > { %v220_v8 = vshrl.u32 %v848_v6, 16  ;;  %209 = vst [vmem:[#allocation2] sm:$0x1] %v208_v7 }
  0x1b   : > { %v242_v13 = vsel %vm1274_vm2, %v238_v10, %v241_v4  ;;  %v255_v14 = vshrl.u32 %v238_v10, 16 }
  0x1c   : > { %v227_v11 = vsel %vm1274_vm2, %v220_v8, %v226_v3  ;;  %243 = vst [vmem:[#allocation2 + $0x2] sm:$0x1] %v242_v13 }
  0x1d   : > { %228 = vst [vmem:[#allocation2 + $0x1] sm:$0x1] %v227_v11  ;;  %v262_v15 = vsel %vm1274_vm2, %v255_v14, %v261_v12 }
  0x1e   : > { %263 = vst [vmem:[#allocation2 + $0x3] sm:$0x1] %v262_v15 }
  0x1f LB: >> { %v1194_v16 = vmov 0.0   ;;  %s283_s4 = ssub.s32 0, %s1191_s3  ;;  %vm1195_vm3 = vmmov 0   ;;  %s853_s15 = sshll.u32 %s1191_s3, 7  ;;  %v351_v53 = vld [vmem:[#allocation3] sm:$0x1]  ;;  %s1191_s3 = sphi %s1290_s3, %s272_s3  }
  0x20   : >> { %929 = vmatprep.subr.bf16.mxu0 %v1194_v16  ;;  %949 = vmatprep.subr.bf16.mxu1 %v1194_v16  ;;  %s892_s5 = sshll.u32 %s283_s4, 8  ;;  %s276_s16 = sshra.s32 %s853_s15, 7  ;;  %v352_v54 = vld [vmem:[#allocation3 + $0x1] sm:$0x1]  ;;  %v353_v1 = vld [vmem:[#allocation3 + $0x2] sm:$0x1] }
  0x21   : >> { %945 = vmatprep.mubr.msk.bf16.mxu0 %vm1195_vm3, %v1194_v16  ;;  %965 = vmatprep.mubr.msk.bf16.mxu1 %vm1195_vm3, %v1194_v16  ;;  %s1305_s8 = scalar_lea.vmem %s1428_s1, %s892_s5  ;;  %s1338_s18 = scalar_lea.vmem [#allocation2], %s276_s16  ;;  %v354_v2 = vld [vmem:[#allocation3 + $0x3] sm:$0x1] }
  0x22   : >> { %v1075_v17 = vld [vmem:[%s1305_s8 + $0x38] sm:$0xff]   ;;  %v1077_v19 = vld [vmem:[%s1305_s8 + $0x30] sm:$0xff]   ;;  %v1079_v21 = vld [vmem:[%s1305_s8 + $0x28] sm:$0xff]   ;;  %s272_s3 = sadd.s32 1, %s1191_s3  }
  0x23   : >> { %v1076_v18 = vld [vmem:[%s1305_s8 + $0x78] sm:$0xff]   ;;  %930 = vmatpush3.bf16.msra.mxu0 %v1075_v17  ;;  %v1078_v20 = vld [vmem:[%s1305_s8 + $0x70] sm:$0xff]   ;;  %v1080_v22 = vld [vmem:[%s1305_s8 + $0x68] sm:$0xff]   ;;  %p271_p12 = scmp.ge.s32.totalorder %s272_s3, 1 }
  0x24   : >> { %950 = vmatpush3.bf16.msra.mxu1 %v1076_v18  ;;  %931 = vmatprep.subr.bf16.mxu0 %v1194_v16  ;;  %v1081_v23 = vld [vmem:[%s1305_s8 + $0x20] sm:$0xff]   ;;  %v1083_v25 = vld [vmem:[%s1305_s8 + $0x18] sm:$0xff]   ;;  %v1085_v27 = vld [vmem:[%s1305_s8 + $0x10] sm:$0xff]   ;;  %s889_s20 = sshll.u32 (%p271_p12), %s1179_s12, 6  ;;  %s742_s28 = sshll.u32 (%p271_p12), %s183_s30, 4  ;;  %s743_s28 = int_to_ptr.vmem [resolvable:$true] %s742_s28 }
  0x25   : >> { %951 = vmatprep.subr.bf16.mxu1 %v1194_v16  ;;  %v1082_v24 = vld [vmem:[%s1305_s8 + $0x60] sm:$0xff]   ;;  %v1084_v26 = vld [vmem:[%s1305_s8 + $0x58] sm:$0xff]   ;;  %v1086_v28 = vld [vmem:[%s1305_s8 + $0x50] sm:$0xff]   ;;  %s740_s27 = scalar_lea.hbm (%p271_p12), %s1429_s2, %s889_s20  ;;  %s727_s29 = scalar_lea.sflag (%p271_p12), [#allocation5], %s181_s23 }
  0x26   : >> { %v1087_v29 = vld [vmem:[%s1305_s8 + $0x8] sm:$0xff]   ;;  %v1089_v31 = vld [vmem:[%s1305_s8] sm:$0xff]   ;;  %v1091_v35 = vld [vmem:[%s1305_s8 + $0xb8] sm:$0xff]   ;;  %s1107_s3 = scalar_lea.vmem (%p271_p12), %s743_s28, 64  ;;  %s1196_s4 = smov (%p271_p12), [#allocation4]  }
  0x27   : >> { %932 = vmatpush3.bf16.msra.mxu0 %v1077_v19  ;;  %v1088_v30 = vld [vmem:[%s1305_s8 + $0x48] sm:$0xff]   ;;  %v1090_v32 = vld [vmem:[%s1305_s8 + $0x40] sm:$0xff]   ;;  %v1092_v36 = vld [vmem:[%s1305_s8 + $0xf8] sm:$0xff]   ;;  %p1108_p13 = scmp.ne.s32.totalorder (%p271_p12), %s743_s28, %s1107_s3  ;;  %s1111_s5 = sshll.u32 (%p271_p12), %s1196_s4, 4  ;;  %s1112_s5 = int_to_ptr.vmem [resolvable:$false] %s1111_s5 }
  0x28   : >> { %952 = vmatpush3.bf16.msra.mxu1 %v1078_v20  ;;  %933 = vmatprep.subr.bf16.mxu0 %v1194_v16  ;;  %v279_v33 = vld [vmem:[%s1338_s18] sm:$0x1]  ;;  %v280_v34 = vld [vmem:[%s1338_s18 + $0x1] sm:$0x1]  ;;  %v1093_v37 = vld [vmem:[%s1305_s8 + $0xb0] sm:$0xff]   ;;  %s1113_s12 = scalar_lea.vmem (%p271_p12), %s1112_s5, 128  ;;  %p1114_p2 = scmp.lt.s32.totalorder (%p271_p12), %s743_s28, %s1112_s5 }
  0x29   : >> { %953 = vmatprep.subr.bf16.mxu1 %v1194_v16  ;;  %v1094_v38 = vld [vmem:[%s1305_s8 + $0xf0] sm:$0xff]   ;;  %v1095_v39 = vld [vmem:[%s1305_s8 + $0xa8] sm:$0xff]   ;;  %v1097_v41 = vld [vmem:[%s1305_s8 + $0xa0] sm:$0xff]   ;;  %p1109_p0 = pnand (%p271_p12), %p1108_p13, %p1252_p4  ;;  %p1115_p3 = scmp.lt.s32.totalorder (%p271_p12), %s1113_s12, %s1107_s3 }
  0x2a   : >> { %v1096_v40 = vld [vmem:[%s1305_s8 + $0xe8] sm:$0xff]   ;;  %v1098_v42 = vld [vmem:[%s1305_s8 + $0xe0] sm:$0xff]   ;;  %v1099_v43 = vld [vmem:[%s1305_s8 + $0x98] sm:$0xff]  }
  0x2b   : >> { %934 = vmatpush3.bf16.msra.mxu0 %v1079_v21  ;;  %v1100_v44 = vld [vmem:[%s1305_s8 + $0xd8] sm:$0xff]   ;;  %v1101_v45 = vld [vmem:[%s1305_s8 + $0x90] sm:$0xff]   ;;  %v1103_v47 = vld [vmem:[%s1305_s8 + $0x88] sm:$0xff]   ;;  %p1110_p1 = pneg (%p271_p12), %p1109_p0  ;;  %p1116_p5 = por (%p271_p12), %p1115_p3, %p1114_p2 }
  0x2c   : >> { %954 = vmatpush3.bf16.msra.mxu1 %v1080_v22  ;;  %935 = vmatprep.subr.bf16.mxu0 %v1194_v16  ;;  %v1102_v46 = vld [vmem:[%s1305_s8 + $0xd0] sm:$0xff]   ;;  %v1104_v48 = vld [vmem:[%s1305_s8 + $0xc8] sm:$0xff]   ;;  %v1105_v49 = vld [vmem:[%s1305_s8 + $0x80] sm:$0xff]  }
  0x2d   : >> { %955 = vmatprep.subr.bf16.mxu1 %v1194_v16  ;;  %v1106_v50 = vld [vmem:[%s1305_s8 + $0xc0] sm:$0xff]   ;;  %p1117_p6 = pnand (%p271_p12), %p1116_p5, %p1110_p1 }
  0x2e   : >> { %v281_v51 = vld [vmem:[%s1338_s18 + $0x2] sm:$0x1]  ;;  %v282_v52 = vld [vmem:[%s1338_s18 + $0x3] sm:$0x1] }
  0x2f   : >> { %936 = vmatpush3.bf16.msra.mxu0 %v1081_v23 }
  0x30   : >> { %956 = vmatpush3.bf16.msra.mxu1 %v1082_v24  ;;  %937 = vmatprep.subr.bf16.mxu0 %v1194_v16 }
  0x31   : >> { %957 = vmatprep.subr.bf16.mxu1 %v1194_v16 }
  0x33   : >> { %938 = vmatpush3.bf16.msra.mxu0 %v1083_v25 }
  0x34   : >> { %958 = vmatpush3.bf16.msra.mxu1 %v1084_v26  ;;  %939 = vmatprep.subr.bf16.mxu0 %v1194_v16 }
  0x35   : >> { %959 = vmatprep.subr.bf16.mxu1 %v1194_v16 }
  0x37   : >> { %940 = vmatpush3.bf16.msra.mxu0 %v1085_v27 }
  0x38   : >> { %960 = vmatpush3.bf16.msra.mxu1 %v1086_v28  ;;  %941 = vmatprep.subr.bf16.mxu0 %v1194_v16 }
  0x39   : >> { %961 = vmatprep.subr.bf16.mxu1 %v1194_v16 }
  0x3b   : >> { %942 = vmatpush3.bf16.msra.mxu0 %v1087_v29 }
  0x3c   : >> { %962 = vmatpush3.bf16.msra.mxu1 %v1088_v30  ;;  %943 = vmatprep.subr.bf16.mxu0 %v1194_v16 }
  0x3d   : >> { %963 = vmatprep.subr.bf16.mxu1 %v1194_v16 }
  0x3f   : >> { %944 = vmatpush3.bf16.msra.mxu0 %v1089_v31 }
  0x40   : >> { %964 = vmatpush3.bf16.msra.mxu1 %v1090_v32  ;;  %969 = vmatprep.subr.bf16.mxu0 %v1194_v16 }
  0x41   : >> { %989 = vmatprep.subr.bf16.mxu1 %v1194_v16 }
  0x42   : >> { %946 = vmatmul.mubr.bf16.vlgmr.msra.gmra.mxu0 %v279_v33 }
  0x43   : >> { %966 = vmatmul.mubr.bf16.vlgmr.msra.gmra.mxu1 %v280_v34  ;;  %970 = vmatpush3.bf16.msra.mxu0 %v1091_v35 }
  0x44   : >> { %990 = vmatpush3.bf16.msra.mxu1 %v1092_v36  ;;  %971 = vmatprep.subr.bf16.mxu0 %v1194_v16 }
  0x45   : >> { %991 = vmatprep.subr.bf16.mxu1 %v1194_v16  ;;  %985 = vmatprep.mubr.msk.bf16.mxu0 %vm1195_vm3, %v1194_v16 }
  0x46   : >> { %1005 = vmatprep.mubr.msk.bf16.mxu1 %vm1195_vm3, %v1194_v16 }
  0x47   : >> { %972 = vmatpush3.bf16.msra.mxu0 %v1093_v37 }
  0x48   : >> { %992 = vmatpush3.bf16.msra.mxu1 %v1094_v38  ;;  %973 = vmatprep.subr.bf16.mxu0 %v1194_v16 }
  0x49   : >> { %993 = vmatprep.subr.bf16.mxu1 %v1194_v16 }
  0x4b   : >> { %974 = vmatpush3.bf16.msra.mxu0 %v1095_v39 }
  0x4c   : >> { %994 = vmatpush3.bf16.msra.mxu1 %v1096_v40  ;;  %975 = vmatprep.subr.bf16.mxu0 %v1194_v16 }
  0x4d   : >> { %995 = vmatprep.subr.bf16.mxu1 %v1194_v16 }
  0x4f   : >> { %976 = vmatpush3.bf16.msra.mxu0 %v1097_v41 }
  0x50   : >> { %996 = vmatpush3.bf16.msra.mxu1 %v1098_v42  ;;  %977 = vmatprep.subr.bf16.mxu0 %v1194_v16 }
  0x51   : >> { %997 = vmatprep.subr.bf16.mxu1 %v1194_v16 }
  0x53   : >> { %978 = vmatpush3.bf16.msra.mxu0 %v1099_v43 }
  0x54   : >> { %998 = vmatpush3.bf16.msra.mxu1 %v1100_v44  ;;  %979 = vmatprep.subr.bf16.mxu0 %v1194_v16 }
  0x55   : >> { %999 = vmatprep.subr.bf16.mxu1 %v1194_v16 }
  0x57   : >> { %980 = vmatpush3.bf16.msra.mxu0 %v1101_v45 }
  0x58   : >> { %1000 = vmatpush3.bf16.msra.mxu1 %v1102_v46  ;;  %981 = vmatprep.subr.bf16.mxu0 %v1194_v16 }
  0x59   : >> { %1001 = vmatprep.subr.bf16.mxu1 %v1194_v16 }
  0x5b   : >> { %982 = vmatpush3.bf16.msra.mxu0 %v1103_v47 }
  0x5c   : >> { %1002 = vmatpush3.bf16.msra.mxu1 %v1104_v48  ;;  %983 = vmatprep.subr.bf16.mxu0 %v1194_v16 }
  0x5d   : >> { %1003 = vmatprep.subr.bf16.mxu1 %v1194_v16 }
  0x5f   : >> { %984 = vmatpush3.bf16.msra.mxu0 %v1105_v49 }
  0x60   : >> { %1004 = vmatpush3.bf16.msra.mxu1 %v1106_v50 }
  0x62   : >> { %986 = vmatmul.mubr.bf16.vlgmr.msra.gmra.mxu0 %v281_v51 }
  0x63   : >> { %1006 = vmatmul.mubr.bf16.vlgmr.msra.gmra.mxu1 %v282_v52 }
 0x102   : >> { %v437_v55 = vpop.f32.mrf.mxu0 }
 0x103   : >> { %v707_v56 = vadd.f32 %v437_v55, %v351_v53  ;;  %v525_v57 = vpop.f32.mrf.mxu1 }
 0x104   : >> { %v708_v58 = vadd.f32 %v525_v57, %v352_v54  ;;  %v947_v59 = vpop.f32.mrf.mxu0 }
 0x105   : >> { %711 = vst [vmem:[#allocation3] sm:$0x1] %v707_v56  ;;  %v967_v60 = vpop.f32.mrf.mxu1 }
 0x106   : >> { %712 = vst [vmem:[#allocation3 + $0x1] sm:$0x1] %v708_v58  ;;  %v440_v61 = vpop.f32.mrf.mxu0 }
 0x107   : >> { %v528_v62 = vpop.f32.mrf.mxu1 }
 0x108   : >> { %v948_v63 = vpop.f32.mrf.mxu0 }
 0x109   : >> { %v968_v0 = vpop.f32.mrf.mxu1 }
 0x122   : >> { %v613_v3 = vpop.f32.mrf.mxu0 }
 0x123   : >> { %v709_v4 = vadd.f32 %v613_v3, %v353_v1  ;;  %v701_v5 = vpop.f32.mrf.mxu1 }
 0x124   : >> { %v710_v6 = vadd.f32 %v701_v5, %v354_v2  ;;  %v987_v7 = vpop.f32.mrf.mxu0 }
 0x125   : >> { %713 = vst [vmem:[#allocation3 + $0x2] sm:$0x1] %v709_v4  ;;  %v1007_v8 = vpop.f32.mrf.mxu1 }
 0x126   : >> { %714 = vst [vmem:[#allocation3 + $0x3] sm:$0x1] %v710_v6  ;;  %v616_v9 = vpop.f32.mrf.mxu0 }
 0x127   : >> { %v704_v10 = vpop.f32.mrf.mxu1 }
 0x128   : >> { %v988_v11 = vpop.f32.mrf.mxu0 }
 0x129   : >> { %v1008_v12 = vpop.f32.mrf.mxu1  ;;  %274 = sbr.rel (!%p271_p12) target bundleno = 31 (0x1f), region = 85 }
 0x12d   : > { %v715_v13 = vld [vmem:[#allocation3] sm:$0xf] (%p271_p12)  }
 0x12e   : > { %716 = vst [vmem:[%s183_s30] sm:$0xf] %v715_v13  }
 0x12f   : > { %1120 = shalt.err (!%p1117_p6)
}
 0x130   : > { %s1121_s6 = scalar_lea.hbm %s740_s27, 64  ;;  %s1125_s30 = scalar_lea.hbm %s1429_s2, 128 }
 0x131   : > { %p1122_p7 = scmp.ne.s32.totalorder %s740_s27, %s1121_s6  ;;  %p1126_p11 = scmp.lt.s32.totalorder %s740_s27, %s1429_s2 }
 0x132   : > { %p1127_p12 = scmp.lt.s32.totalorder %s1125_s30, %s1121_s6 }
 0x133   : > { %p1123_p9 = pnand %p1122_p7, %p1252_p4 }
 0x134   : > { %p1128_p13 = por %p1127_p12, %p1126_p11 }
 0x135   : > { %p1124_p10 = pneg %p1123_p9 }
 0x137   : > { %p1129_p0 = pnand %p1128_p13, %p1124_p10 }
 0x139   : > { %1132 = shalt.err (!%p1129_p0)
}
 0x13a   : > { %1009 = dma.vmem_to_hbm [thread:$0]  (%p1252_p4), %s743_s28, 64, %s740_s27, %s727_s29  }
 0x13b PF: > { %p1015_p1 = scmp.ge.s32.totalorder %s1187_s14, 2  ;;  %s754_s15 = sand.u32 1, %s1167_s9  }
 0x13c   : > { %s755_s16 = scalar_lea.sflag [#allocation5], %s754_s15 }
 0x13d   : > { %p1012_p2 = pnand %p1015_p1, %p1259_p8 }
 0x13f   : > { %p1013_p3 = pneg %p1012_p2 }
 0x141   : > { %1162 = dma.done.wait (%p1013_p3), %s755_s16, 64  }
 0x142   : > { %1164 = vsyncadd (%p1013_p3), %s755_s16, 4294967232  ;;  %s15_s14 = sadd.s32 1, %s1187_s14   ;;  %s1434_s9 = smov %s1171_s10 }
 0x143   : > { %p12_p5 = scmp.ge.s32.totalorder %s15_s14, 4   ;;  %s1435_s10 = smov %s1175_s11 }
 0x144   : > { %s1436_s11 = smov %s1265_s22  ;;  %s1437_s12 = smov %s1183_s13 }
 0x145   : > { %s1438_s13 = smov %s1440_s17  ;;  %14 = sbr.rel (!%p12_p5) target bundleno = 4 (0x4), region = 96 }
 0x14a   :  { %760 = vsyncpa [#allocation5], 1 }
 0x14b   :  { %762 = vsyncpa [#allocation5 + $0x1], 1 }

</bundles_post_ra>
